<compile_context>
chip_gen: v5e
topology: v5e:2x2
jax: 0.10.0
libtpu: 0.0.40
codegen_flags: <defaults>
</compile_context>

<pallas_src>
import functools

import jax
import jax.numpy as jnp
from jax import lax
from jax.experimental import pallas as pl
from jax.experimental.pallas import tpu as pltpu


_LANE = 128


def _round_up(x, m):
    return ((x + m - 1) // m) * m


def _sublane_multiple(dtype):
    # minimum second-minor tile: f32 -> 8, bf16/f16 -> 16, int8/fp8 -> 32
    return max(8, 32 // jnp.dtype(dtype).itemsize)


def _vmem_budget():
    """(streamed-tile budget, scoped vmem limit) in bytes, safe on v5e/v6e/v7x."""
    budget, limit = 24 * 1024 * 1024, 32 * 1024 * 1024
    try:
        # Larger tiles on 128 MiB-VMEM parts (v5e/v6e); keep v7x (64 MiB/TC)
        # on the conservative setting.
        cap = getattr(pltpu.get_tpu_info(), "vmem_capacity_bytes", None)
        if cap is not None and cap >= 100 * 1024 * 1024:
            budget, limit = 48 * 1024 * 1024, 64 * 1024 * 1024
    except Exception:
        pass
    return budget, limit


def _choose_block_b(batch, per_row_vmem_bytes, sub_mult, budget, min_tiles=4):
    """Largest row tile whose double-buffered VMEM footprint fits `budget`,
    capped so the 1-D grid has >= min_tiles steps (lets v7x shard the
    "parallel" grid axis across both TensorCores)."""
    rows = budget // (2 * per_row_vmem_bytes)            # 2 = double buffering
    rows = max(sub_mult, (rows // sub_mult) * sub_mult)
    cap = _round_up(-(-batch // min_tiles), sub_mult)    # >= min_tiles tiles
    block_b = min(rows, cap)
    block_b = min(block_b, _round_up(batch, sub_mult))   # never exceed batch
    return max(block_b, sub_mult)


def _ce_ls_kernel(x_ref, tgt_ref, out_ref, *, epsilon, num_classes, batch,
                  applied_softmax, dense_targets, partial_sum):
    """One (block_b, K) tile of inputs plus either a (block_b, 1) int32 label
    column or a (block_b, K) dense-target tile.

    loss_i = -sum_k [ (1-eps)*t_ik + eps/K ] * log_probs_ik
    """
    block_b, k = x_ref.shape
    x = x_ref[...].astype(jnp.float32)          # cast in-kernel; stream native dtype

    if applied_softmax:
        # inputs are probabilities; log(0) -> -inf, exactly like the torch module
        log_probs = jnp.log(x)
    else:
        # numerically stable log-softmax over the class (lane) axis
        m = jnp.max(x, axis=1, keepdims=True)
        shifted = x - m
        log_probs = shifted - jnp.log(jnp.sum(jnp.exp(shifted), axis=1, keepdims=True))

    if dense_targets:
        t = tgt_ref[...].astype(jnp.float32)
        w = (1.0 - epsilon) * t + (epsilon / num_classes)
    else:
        lbl = tgt_ref[...]                                         # (block_b, 1) int32
        col = lax.broadcasted_iota(jnp.int32, (block_b, k), 1)
        # fused smoothed one-hot weight: eps/K + (1-eps)*[col == label]
        w = (epsilon / num_classes) + jnp.where(col == lbl, 1.0 - epsilon, 0.0)

    # single lane-axis (XLU) reduction per tile
    loss_col = -jnp.sum(w * log_probs, axis=1, keepdims=True)      # (block_b, 1)

    if partial_sum:
        # mask rows of the trailing partial block, emit one per-tile partial sum
        i = pl.program_id(0)
        row = lax.broadcasted_iota(jnp.int32, (block_b, 1), 0)
        valid = (i * block_b + row) < batch
        masked = jnp.where(valid, loss_col, 0.0)
        out_ref[...] = jnp.sum(masked, axis=0, keepdims=True).reshape(1, 1, 1)
    else:
        # per-sample losses; the trailing partial block store is clipped by Pallas
        out_ref[...] = loss_col


def cross_entropy_label_smooth(inputs, targets, *, num_classes, epsilon=0.1,
                               reduction=True, applied_softmax=True):
    """JAX/Pallas equivalent of CrossEntropyLabelSmooth.forward.

    inputs : (B, K) probabilities (applied_softmax=True) or logits; f32/bf16/f16
    targets: (B,) int class labels   OR   (B, K) float soft / one-hot targets
    """
    if inputs.dtype not in (jnp.float32, jnp.bfloat16, jnp.float16):
        inputs = inputs.astype(jnp.float32)
    B, K = inputs.shape
    assert K == num_classes

    dense_targets = (targets.shape == inputs.shape)
    if dense_targets:
        if targets.dtype not in (jnp.float32, jnp.bfloat16, jnp.float16):
            targets = targets.astype(jnp.float32)
        tgt = targets
    else:
        tgt = targets.astype(jnp.int32).reshape(B, 1)

    x_item = jnp.dtype(inputs.dtype).itemsize
    t_item = jnp.dtype(tgt.dtype).itemsize
    sub_mult = max(_sublane_multiple(inputs.dtype),
                   _sublane_multiple(tgt.dtype) if dense_targets else 8)

    # VMEM accounting per tile row: lane padding to 128 applies to the streamed
    # tile AND to the narrow (block_b, 1) label / per-sample-loss columns.
    k_vmem = _round_up(K, _LANE)
    per_row = k_vmem * x_item
    per_row += k_vmem * t_item if dense_targets else _LANE * 4
    per_row += 0 if reduction else _LANE * 4    # reduction=True output is one (1,1,1) block

    budget, vmem_limit = _vmem_budget()
    block_b = _choose_block_b(B, per_row, sub_mult, budget - 512 * 1024)
    num_tiles = -(-B // block_b)
    grid = (num_tiles,)

    kernel = functools.partial(
        _ce_ls_kernel, epsilon=float(epsilon), num_classes=int(num_classes),
        batch=int(B), applied_softmax=bool(applied_softmax),
        dense_targets=bool(dense_targets), partial_sum=bool(reduction))

    in_specs = [
        pl.BlockSpec((block_b, K), lambda i: (i, 0)),
        pl.BlockSpec((block_b, K) if dense_targets else (block_b, 1),
                     lambda i: (i, 0)),
    ]

    if reduction:
        out_shape = jax.ShapeDtypeStruct((num_tiles, 1, 1), jnp.float32)
        out_spec = pl.BlockSpec((1, 1, 1), lambda i: (i, 0, 0))
        out_bytes = num_tiles * 4
    else:
        out_shape = jax.ShapeDtypeStruct((B, 1), jnp.float32)
        out_spec = pl.BlockSpec((block_b, 1), lambda i: (i, 0))
        out_bytes = B * 4

    cost = pl.CostEstimate(
        flops=int(6 * B * K),
        transcendentals=int(B * K + (0 if applied_softmax else B)),
        bytes_accessed=int(B * K * x_item
                           + (B * K * t_item if dense_targets else B * 4)
                           + out_bytes),
    )

    out = pl.pallas_call(
        kernel,
        out_shape=out_shape,
        grid_spec=pltpu.PrefetchScalarGridSpec(
            num_scalar_prefetch=0,
            grid=grid,
            in_specs=in_specs,
            out_specs=out_spec,
        ),
        compiler_params=pltpu.CompilerParams(
            dimension_semantics=("parallel",),
            vmem_limit_bytes=vmem_limit,
        ),
        cost_estimate=cost,
    )(inputs, tgt)

    if reduction:
        return jnp.sum(out) / B
    return out[:, 0]


def _reference(inputs, targets, *, num_classes, epsilon=0.1, reduction=True,
               applied_softmax=True):
    """Pure-JAX reference mirroring the PyTorch module."""
    inputs = inputs.astype(jnp.float32)
    if applied_softmax:
        log_probs = jnp.log(inputs)
    else:
        log_probs = jax.nn.log_softmax(inputs, axis=1)
    if targets.shape != inputs.shape:
        targets = jax.nn.one_hot(targets, num_classes, dtype=jnp.float32)
    targets = (1.0 - epsilon) * targets.astype(jnp.float32) + epsilon / num_classes
    loss = jnp.sum(-targets * log_probs, axis=1)
    return jnp.mean(loss) if reduction else loss


if __name__ == "__main__":
    key = jax.random.PRNGKey(0)
    B, K = 19, 37                      # deliberately not multiples of (8, 128)
    k1, k2 = jax.random.split(key)

    logits = jax.random.normal(k1, (B, K), dtype=jnp.float32)
    probs = jax.nn.softmax(logits, axis=1)                 # "after softmax" inputs
    labels = jax.random.randint(k2, (B,), 0, K, dtype=jnp.int32)

    # 1) probabilities + int labels, mean reduction (default torch call)
    out_mean = jax.block_until_ready(cross_entropy_label_smooth(
        probs, labels, num_classes=K, epsilon=0.1,
        reduction=True, applied_softmax=True))
    ref_mean = _reference(probs, labels, num_classes=K, epsilon=0.1,
                          reduction=True, applied_softmax=True)
    assert jnp.allclose(out_mean, ref_mean, atol=1e-5, rtol=1e-5), (out_mean, ref_mean)

    # 2) logits + int labels, per-sample losses, in-kernel log-softmax
    out_vec = jax.block_until_ready(cross_entropy_label_smooth(
        logits, labels, num_classes=K, epsilon=0.1,
        reduction=False, applied_softmax=False))
    ref_vec = _reference(logits, labels, num_classes=K, epsilon=0.1,
                         reduction=False, applied_softmax=False)
    assert jnp.allclose(out_vec, ref_vec, atol=1e-5, rtol=1e-5)

    # 3) dense (one-hot / soft) targets with the same shape as inputs
    onehot = jax.nn.one_hot(labels, K, dtype=jnp.float32)
    out_dense = jax.block_until_ready(cross_entropy_label_smooth(
        probs, onehot, num_classes=K, epsilon=0.1,
        reduction=True, applied_softmax=True))
    assert jnp.allclose(out_dense, ref_mean, atol=1e-5, rtol=1e-5), (out_dense, ref_mean)

    # 4) bf16 logits streamed natively (no wrapper upcast), mean reduction
    out_bf16 = jax.block_until_ready(cross_entropy_label_smooth(
        logits.astype(jnp.bfloat16), labels, num_classes=K, epsilon=0.1,
        reduction=True, applied_softmax=False))
    ref_bf16 = _reference(logits.astype(jnp.bfloat16), labels, num_classes=K,
                          epsilon=0.1, reduction=True, applied_softmax=False)
    assert jnp.allclose(out_bf16, ref_bf16, atol=1e-4, rtol=1e-4), (out_bf16, ref_bf16)

    print("KERNEL_OK")
</pallas_src>

<mosaic_0001>
module attributes {stable_mosaic.version = 11 : i64} {
  func.func @_ce_ls_kernel(%arg0: i32, %arg1: memref<8x37xf32, #tpu.memory_space<vmem>>, %arg2: memref<8x1xi32, #tpu.memory_space<vmem>>, %arg3: memref<1x1x1xf32, #tpu.memory_space<vmem>>) attributes {dimension_semantics = [#tpu.dimension_semantics<parallel>], iteration_bounds = array<i64: 3>, scalar_prefetch = 0 : i64, scratch_operands = 0 : i64, tpu.core_type = #tpu.core_type<tc>, window_params = [{transform_indices = @transform_0, window_bounds = array<i64: 8, 37>}, {transform_indices = @transform_1, window_bounds = array<i64: 8, 1>}, {transform_indices = @transform_2, window_bounds = array<i64: 1, 1, 1>}]} {
    %c0 = arith.constant 0 : index
    %c0_0 = arith.constant 0 : index
    %0 = vector.load %arg1[%c0, %c0_0] : memref<8x37xf32, #tpu.memory_space<vmem>>, vector<8x37xf32>
    %1 = math.log %0 : vector<8x37xf32>
    %c0_1 = arith.constant 0 : index
    %c0_2 = arith.constant 0 : index
    %2 = vector.load %arg2[%c0_1, %c0_2] : memref<8x1xi32, #tpu.memory_space<vmem>>, vector<8x1xi32>
    %3 = tpu.iota {dimensions = array<i32: 1>} : vector<8x37xi32>
    %4 = vector.broadcast %2 : vector<8x1xi32> to vector<8x37xi32>
    %5 = arith.cmpi eq, %3, %4 : vector<8x37xi32>
    %cst = arith.constant 0.899999976 : f32
    %cst_3 = arith.constant 0.000000e+00 : f32
    %6 = vector.broadcast %cst : f32 to vector<8x37xf32>
    %7 = vector.broadcast %cst_3 : f32 to vector<8x37xf32>
    %8 = arith.select %5, %6, %7 : vector<8x37xi1>, vector<8x37xf32>
    %cst_4 = arith.constant 0.00270270277 : f32
    %9 = vector.broadcast %cst_4 : f32 to vector<8x37xf32>
    %10 = arith.addf %9, %8 : vector<8x37xf32>
    %11 = arith.mulf %10, %1 : vector<8x37xf32>
    %cst_5 = arith.constant dense<0.000000e+00> : vector<8xf32>
    %12 = vector.multi_reduction <add>, %11, %cst_5 [1] : vector<8x37xf32> to vector<8xf32>
    %13 = vector.shape_cast %12 : vector<8xf32> to vector<8x1xf32>
    %cst_6 = arith.constant 0.000000e+00 : f32
    %14 = vector.broadcast %cst_6 : f32 to vector<8x1xf32>
    %15 = arith.subf %14, %13 : vector<8x1xf32>
    %16 = tpu.iota {dimensions = array<i32: 0>} : vector<8x1xi32>
    %c8_i32 = arith.constant 8 : i32
    %17 = arith.muli %arg0, %c8_i32 : i32
    %18 = vector.broadcast %17 : i32 to vector<8x1xi32>
    %19 = arith.addi %18, %16 : vector<8x1xi32>
    %c19_i32 = arith.constant 19 : i32
    %20 = vector.broadcast %c19_i32 : i32 to vector<8x1xi32>
    %21 = arith.cmpi slt, %19, %20 : vector<8x1xi32>
    %cst_7 = arith.constant 0.000000e+00 : f32
    %22 = vector.broadcast %cst_7 : f32 to vector<8x1xf32>
    %23 = arith.select %21, %15, %22 : vector<8x1xi1>, vector<8x1xf32>
    %cst_8 = arith.constant dense<0.000000e+00> : vector<1xf32>
    %24 = vector.multi_reduction <add>, %23, %cst_8 [0] : vector<8x1xf32> to vector<1xf32>
    %25 = vector.shape_cast %24 : vector<1xf32> to vector<1x1xf32>
    %26 = vector.shape_cast %25 : vector<1x1xf32> to vector<1x1x1xf32>
    %c0_9 = arith.constant 0 : index
    %c0_10 = arith.constant 0 : index
    %c0_11 = arith.constant 0 : index
    %27 = vector.load %arg3[%c0_9, %c0_10, %c0_11] : memref<1x1x1xf32, #tpu.memory_space<vmem>>, vector<1x1x1xf32>
    tpu.vector_store %arg3[%c0_9, %c0_10, %c0_11], %26 {strides = array<i32>} : memref<1x1x1xf32, #tpu.memory_space<vmem>>, vector<1x1x1xf32>,
    return
  }
  func.func @transform_0(%arg0: i32) -> (i32, i32) {
    %c0_i32 = arith.constant 0 : i32
    %c0_i32_0 = arith.constant 0 : i32
    return %arg0, %c0_i32 : i32, i32
  }
  func.func @transform_1(%arg0: i32) -> (i32, i32) {
    %c0_i32 = arith.constant 0 : i32
    %c0_i32_0 = arith.constant 0 : i32
    return %arg0, %c0_i32 : i32, i32
  }
  func.func @transform_2(%arg0: i32) -> (i32, i32, i32) {
    %c0_i32 = arith.constant 0 : i32
    %c0_i32_0 = arith.constant 0 : i32
    %c0_i32_1 = arith.constant 0 : i32
    return %arg0, %c0_i32, %c0_i32_0 : i32, i32, i32
  }
}

</mosaic_0001>

<bundles_post_ra>
// kernel: tpu_custom_call.1
= control target key start
LH: loop header
LB: loop body
LE: loop exit
PB: predicated region body
PF: predicated region fallthrough
CT: control target
= control target key end

     0   :  { %s294_s9 = smov 0   ;;  %s323_s0 = inlined_call_operand.vmem [shape: f32[19,37], index: 0, kind: input, shape index: {}]   ;;  %s324_s1 = inlined_call_operand.vmem [shape: s32[19,1], index: 1, kind: input, shape index: {}]   ;;  %s325_s2 = inlined_call_operand.vmem [shape: f32[3,1,1], index: 2, kind: output, shape index: {}]  }
   0x1 LB: > { %s300_s10 = sadd.s32 4294967295, %s275_s9   ;;  %p250_p0 = scmp.ge.s32.totalorder %s275_s9, 1  ;;  %s275_s9 = sphi %s294_s9, %s12_s9  }
   0x2   : > { %p120_p1 = scmp.lt.s32.totalorder %s275_s9, 4 }
   0x4   : > { %p121_p2 = pnand %p250_p0, %p120_p1 }
   0x5   : > { %p143_p3 = scmp.lt.s32.totalorder (!%p121_p2), %s300_s10, 2  ;;  %s253_s19 = sshll.u32 (!%p121_p2), %s300_s10, 3 }
   0x6   : > { %124 = sbr.rel (%p121_p2) target bundleno = 270 (0x10e), region = 28 }
   0xb   : > { %v277_v0 = vmov 0   ;;  %s306_s11 = scalar_select %p143_p3, %s300_s10, 2  ;;  %v158_v3 = vlaneseq  ;;  %v278_v8 = vmov 0.0   ;;  %vm167_vm1 = vcmask 302080  }
   0xc   : > { %266 = vset.pattern.permute.xlu0 %v277_v0  ;;  %v175_v14 = vstv %s253_s19  ;;  %vm185_vm3 = vcmask 0  }
   0xd   : > { %s251_s12 = sshll.u32 %s306_s11, 3  ;;  %v159_v4 = vand.u32 127, %v158_v3  ;;  %v173_v13 = vshrl.u32 %v158_v3, 7  ;;  %s153_s22 = scalar_lea.vmem %s325_s2, %s306_s11 }
   0xe   : > { %s150_s15 = scalar_lea.vmem %s324_s1, %s251_s12  ;;  %s146_s18 = scalar_lea.vmem %s323_s0, %s251_s12 }
   0xf   : > { %v157_v1 = vld [vmem:[%s150_s15] sm:$0xff]  ;;  %v176_v15 = vadd.s32 %v175_v14, %v173_v13 }
  0x10   : > { %161 = vperm.xlu0 %266, %v157_v1   ;;  %v154_v2 = vld [vmem:[%s146_s18] sm:$0xff] }
  0x11   : > { %267 = vlog2.f32 %v154_v2  ;;  %vm177_vm2 = vcmp.lt.s32.totalorder %v176_v15, 19 }
  0x17   : > { %v268_v5 = vpop.eup %267 }
  0x18   : > { %v156_v7 = vmul.f32 0.6931472, %v268_v5 }
  0x82   : > { %v162_v6 = vpop.permute.xlu0 %161 }
  0x83   : > { %vm163_vm0 = vcmp.eq.s32.totalorder %v159_v4, %v162_v6 }
  0x84   : > { %v164_v9 = vsel %vm163_vm0, 0.9, %v278_v8 }
  0x85   : > { %v165_v10 = vadd.f32 0.0027027028, %v164_v9 }
  0x87   : > { %v166_v11 = vmul.f32 %v165_v10, %v156_v7 }
  0x89   : > { %v168_v12 = vsel %vm167_vm1, %v166_v11, 0.0 }
  0x8a   : > { %169 = vadd.xlane.f32.xlu0 %v168_v12 }
  0xfd   : > { %v170_v16 = vpop.xlane.xlu0 %169 }
  0xfe   : > { %v171_v17 = vsub.f32 0.0, %v170_v16 }
 0x100   : > { %v178_v18 = vsel %vm177_vm2, %v171_v17, 0.0 }
 0x101   : > { %v179_v19 = vrot.slane %v178_v18, 4 }
 0x103   : > { %v180_v20 = vadd.f32 %v179_v19, %v178_v18 }
 0x105   : > { %v181_v21 = vrot.slane %v180_v20, 2 }
 0x107   : > { %v182_v22 = vadd.f32 %v181_v21, %v180_v20 }
 0x109   : > { %v183_v23 = vrot.slane %v182_v22, 1 }
 0x10b   : > { %v184_v24 = vadd.f32 %v183_v23, %v182_v22 }
 0x10d   : > { %186 = vst.msk [vmem:[%s153_s22] sm:$0x1] %vm185_vm3, %v184_v24 }
 0x10e PF: > { %s12_s9 = sadd.s32 1, %s275_s9  }
 0x10f   : > { %p9_p4 = scmp.ge.s32.totalorder %s12_s9, 5  }
 0x111   :  { %11 = sbr.rel (!%p9_p4) target bundleno = 1 (0x1), region = 61 }

</bundles_post_ra>
